<compile_context>
chip_gen: v6e
topology: v6e:2x2x1
jax: 0.10.0
libtpu: 0.0.40
codegen_flags: <defaults>
</compile_context>

<pallas_src>
import jax
import jax.numpy as jnp
from jax import lax
from jax.experimental import pallas as pl
from jax.experimental.pallas import tpu as pltpu


EPS = 1e-5  # nn.LayerNorm default


def _layernorm_kernel(x_ref, w_ref, b_ref, o_ref):
    # x_ref / o_ref: (1, C, TILE_HW) bf16 blocks; w_ref / b_ref: (C, 1) bf16 (resident,
    # same block index every grid step).
    x = x_ref[0].astype(jnp.float32)                          # (C, T) f32
    inv_c = 1.0 / x.shape[0]                                  # compile-time constant

    mean = jnp.sum(x, axis=0, keepdims=True) * inv_c          # (1, T)
    xc = x - mean
    var = jnp.sum(xc * xc, axis=0, keepdims=True) * inv_c     # (1, T), biased (torch)
    inv = lax.rsqrt(var + EPS)                                # (1, T)

    w = w_ref[...].astype(jnp.float32)                        # (C, 1)
    b = b_ref[...].astype(jnp.float32)                        # (C, 1)
    o_ref[0] = (xc * (inv * w) + b).astype(o_ref.dtype)


def _pick_tile_hw(C, HW, max_block_elems=512 * 1024):
    """Lane-dense spatial tile: a multiple of 128 (or the full extent), VMEM-capped."""
    if HW % 128 != 0:
        # (8,128) rule: last block dim must be a 128-multiple or the full array extent.
        return HW
    t = (max_block_elems // max(C, 1)) // 128 * 128
    t = max(t, 128)
    return min(t, HW)


def layernorm_nchw(x, weight, bias, *, tile_hw=None):
    """x: (N, C, H, W); weight, bias: (C,). Returns (N, C, H, W) in x.dtype."""
    N, C, H, W = x.shape
    HW = H * W

    x3 = x.reshape(N, C, HW)        # free: contiguous flatten, no data movement
    w2 = weight.reshape(C, 1)
    b2 = bias.reshape(C, 1)

    if tile_hw is None:
        tile_hw = _pick_tile_hw(C, HW)
    n_hw = pl.cdiv(HW, tile_hw)
    grid = (N, n_hw)

    out = pl.pallas_call(
        _layernorm_kernel,
        out_shape=jax.ShapeDtypeStruct((N, C, HW), x.dtype),
        grid_spec=pltpu.PrefetchScalarGridSpec(
            num_scalar_prefetch=0,
            grid=grid,
            in_specs=[
                pl.BlockSpec((1, C, tile_hw), lambda n, j: (n, 0, j)),
                pl.BlockSpec((C, 1), lambda n, j: (0, 0)),
                pl.BlockSpec((C, 1), lambda n, j: (0, 0)),
            ],
            out_specs=pl.BlockSpec((1, C, tile_hw), lambda n, j: (n, 0, j)),
        ),
        compiler_params=pltpu.CompilerParams(
            dimension_semantics=("parallel", "parallel"),
            # Explicit scoped-VMEM budget: well above the double-buffered bf16 in/out
            # tiles + f32 temporaries, yet safe on v7x (64 MiB physical) and the
            # 16 MiB scoped default on v5e.
            vmem_limit_bytes=48 << 20,
        ),
    )(x3, w2, b2)

    return out.reshape(N, C, H, W)


if __name__ == "__main__":
    key = jax.random.PRNGKey(0)
    kx, kw, kb = jax.random.split(key, 3)

    N, C, H, W = 2, 4, 16, 16
    x = jax.random.normal(kx, (N, C, H, W), dtype=jnp.float32).astype(jnp.bfloat16)
    # nn.LayerNorm default init is weight=1, bias=0; use deterministic random affine
    # params to exercise the scale/shift path.
    weight = (1.0 + 0.1 * jax.random.normal(kw, (C,), dtype=jnp.float32)).astype(jnp.bfloat16)
    bias = (0.1 * jax.random.normal(kb, (C,), dtype=jnp.float32)).astype(jnp.bfloat16)

    y = layernorm_nchw(x, weight, bias)
    y = jax.block_until_ready(y)

    # reference in plain JAX (f32 math, bf16 output) for a sanity check
    x32 = jnp.transpose(x, (0, 2, 3, 1)).astype(jnp.float32)
    mean = jnp.mean(x32, axis=-1, keepdims=True)
    var = jnp.mean((x32 - mean) ** 2, axis=-1, keepdims=True)
    ref = ((x32 - mean) * lax.rsqrt(var + EPS)
           * weight.astype(jnp.float32) + bias.astype(jnp.float32))
    ref = jnp.transpose(ref.astype(jnp.bfloat16), (0, 3, 1, 2))

    assert y.shape == (N, C, H, W) and y.dtype == jnp.bfloat16
    assert jnp.max(jnp.abs(y.astype(jnp.float32) - ref.astype(jnp.float32))) < 3e-2

    print("KERNEL_OK")
</pallas_src>

<mosaic_0001>
module attributes {stable_mosaic.version = 11 : i64} {
  func.func @_layernorm_kernel(%arg0: i32, %arg1: i32, %arg2: memref<1x4x256xbf16, #tpu.memory_space<vmem>>, %arg3: memref<4x1xbf16, #tpu.memory_space<vmem>>, %arg4: memref<4x1xbf16, #tpu.memory_space<vmem>>, %arg5: memref<1x4x256xbf16, #tpu.memory_space<vmem>>) attributes {dimension_semantics = [#tpu.dimension_semantics<parallel>, #tpu.dimension_semantics<parallel>], iteration_bounds = array<i64: 2, 1>, scalar_prefetch = 0 : i64, scratch_operands = 0 : i64, tpu.core_type = #tpu.core_type<tc>, window_params = [{transform_indices = @transform_0, window_bounds = array<i64: 1, 4, 256>}, {pipeline_mode = #tpu.pipeline_mode<synchronous>, transform_indices = @transform_1, window_bounds = array<i64: 4, 1>}, {pipeline_mode = #tpu.pipeline_mode<synchronous>, transform_indices = @transform_2, window_bounds = array<i64: 4, 1>}, {transform_indices = @transform_3, window_bounds = array<i64: 1, 4, 256>}]} {
    %c0 = arith.constant 0 : index
    %c0_0 = arith.constant 0 : index
    %c0_1 = arith.constant 0 : index
    %0 = vector.load %arg2[%c0, %c0_0, %c0_1] : memref<1x4x256xbf16, #tpu.memory_space<vmem>>, vector<1x4x256xbf16>
    %1 = vector.shape_cast %0 : vector<1x4x256xbf16> to vector<4x256xbf16>
    %2 = arith.extf %1 : vector<4x256xbf16> to vector<4x256xf32>
    %cst = arith.constant dense<0.000000e+00> : vector<256xf32>
    %3 = vector.multi_reduction <add>, %2, %cst [0] : vector<4x256xf32> to vector<256xf32>
    %4 = vector.shape_cast %3 : vector<256xf32> to vector<1x256xf32>
    %cst_2 = arith.constant 2.500000e-01 : f32
    %5 = vector.broadcast %cst_2 : f32 to vector<1x256xf32>
    %6 = arith.mulf %4, %5 : vector<1x256xf32>
    %7 = vector.broadcast %6 : vector<1x256xf32> to vector<4x256xf32>
    %8 = arith.subf %2, %7 : vector<4x256xf32>
    %9 = arith.mulf %8, %8 : vector<4x256xf32>
    %cst_3 = arith.constant dense<0.000000e+00> : vector<256xf32>
    %10 = vector.multi_reduction <add>, %9, %cst_3 [0] : vector<4x256xf32> to vector<256xf32>
    %11 = vector.shape_cast %10 : vector<256xf32> to vector<1x256xf32>
    %cst_4 = arith.constant 2.500000e-01 : f32
    %12 = vector.broadcast %cst_4 : f32 to vector<1x256xf32>
    %13 = arith.mulf %11, %12 : vector<1x256xf32>
    %cst_5 = arith.constant 9.99999974E-6 : f32
    %14 = vector.broadcast %cst_5 : f32 to vector<1x256xf32>
    %15 = arith.addf %13, %14 : vector<1x256xf32>
    %16 = math.rsqrt %15 : vector<1x256xf32>
    %c0_6 = arith.constant 0 : index
    %c0_7 = arith.constant 0 : index
    %17 = vector.load %arg3[%c0_6, %c0_7] : memref<4x1xbf16, #tpu.memory_space<vmem>>, vector<4x1xbf16>
    %18 = arith.extf %17 : vector<4x1xbf16> to vector<4x1xf32>
    %c0_8 = arith.constant 0 : index
    %c0_9 = arith.constant 0 : index
    %19 = vector.load %arg4[%c0_8, %c0_9] : memref<4x1xbf16, #tpu.memory_space<vmem>>, vector<4x1xbf16>
    %20 = arith.extf %19 : vector<4x1xbf16> to vector<4x1xf32>
    %21 = vector.broadcast %16 : vector<1x256xf32> to vector<4x256xf32>
    %22 = vector.broadcast %18 : vector<4x1xf32> to vector<4x256xf32>
    %23 = arith.mulf %21, %22 : vector<4x256xf32>
    %24 = arith.mulf %8, %23 : vector<4x256xf32>
    %25 = vector.broadcast %20 : vector<4x1xf32> to vector<4x256xf32>
    %26 = arith.addf %24, %25 : vector<4x256xf32>
    %27 = arith.truncf %26 : vector<4x256xf32> to vector<4x256xbf16>
    %c0_10 = arith.constant 0 : index
    %c0_11 = arith.constant 0 : index
    %c0_12 = arith.constant 0 : index
    %28 = vector.load %arg5[%c0_10, %c0_11, %c0_12] : memref<1x4x256xbf16, #tpu.memory_space<vmem>>, vector<1x4x256xbf16>
    %29 = vector.shape_cast %28 : vector<1x4x256xbf16> to vector<4x256xbf16>
    %30 = vector.shape_cast %27 : vector<4x256xbf16> to vector<1x4x256xbf16>
    tpu.vector_store %arg5[%c0_10, %c0_11, %c0_12], %30 {strides = array<i32>} : memref<1x4x256xbf16, #tpu.memory_space<vmem>>, vector<1x4x256xbf16>,
    return
  }
  func.func @transform_0(%arg0: i32, %arg1: i32) -> (i32, i32, i32) {
    %c0_i32 = arith.constant 0 : i32
    %c0_i32_0 = arith.constant 0 : i32
    return %arg0, %c0_i32, %arg1 : i32, i32, i32
  }
  func.func @transform_1(%arg0: i32, %arg1: i32) -> (i32, i32) {
    %c0_i32 = arith.constant 0 : i32
    %c0_i32_0 = arith.constant 0 : i32
    %c0_i32_1 = arith.constant 0 : i32
    return %c0_i32, %c0_i32_0 : i32, i32
  }
  func.func @transform_2(%arg0: i32, %arg1: i32) -> (i32, i32) {
    %c0_i32 = arith.constant 0 : i32
    %c0_i32_0 = arith.constant 0 : i32
    %c0_i32_1 = arith.constant 0 : i32
    return %c0_i32, %c0_i32_0 : i32, i32
  }
  func.func @transform_3(%arg0: i32, %arg1: i32) -> (i32, i32, i32) {
    %c0_i32 = arith.constant 0 : i32
    %c0_i32_0 = arith.constant 0 : i32
    return %arg0, %c0_i32, %arg1 : i32, i32, i32
  }
}

</mosaic_0001>

<bundles_post_ra>
// kernel: tpu_custom_call.1
= control target key start
LH: loop header
LB: loop body
LE: loop exit
PB: predicated region body
PF: predicated region fallthrough
CT: control target
= control target key end

     0   :  { %8 = vsyncpa [#allocation3], 0  ;;  %s785_s0 = inlined_call_operand.hbm [shape: bf16[2,4,256], index: 0, kind: input, shape index: {}]   ;;  %s786_s1 = inlined_call_operand.vmem [shape: bf16[4,1], index: 1, kind: input, shape index: {}]   ;;  %s787_s2 = inlined_call_operand.vmem [shape: bf16[4,1], index: 2, kind: input, shape index: {}]   ;;  %s788_s3 = inlined_call_operand.hbm [shape: bf16[2,4,256], index: 3, kind: output, shape index: {}]  }
   0x1   :  { %10 = vsyncpa [#allocation3 + $0x1], 0 }
   0x2   :  { %11 = vsyncpa [#allocation4], 0 }
   0x3   :  { %13 = vsyncpa [#allocation4 + $0x1], 0  ;;  %s637_s12 = smov 0   ;;  %s639_s13 = smov 0  }
   0x4   :  { %s641_s14 = smov 0   ;;  %s643_s15 = smov 0  }
   0x5   :  { %s645_s16 = smov 0   ;;  %s647_s17 = smov 0  }
   0x6 LB: > { %s415_s18 = sadd.s32 4294967295, %s611_s17   ;;  %s416_s19 = sadd.s32 4294967294, %s611_s17   ;;  %s611_s17 = sphi %s647_s17, %s19_s17   ;;  %s607_s16 = sphi %s645_s16, %s800_s16   ;;  %s603_s15 = sphi %s643_s15, %s799_s15   ;;  %s599_s14 = sphi %s641_s14, %s798_s14   ;;  %s595_s13 = sphi %s639_s13, %s797_s13   ;;  %s591_s12 = sphi %s637_s12, %s796_s12  }
   0x7   : > { %s31_s20 = sadd.s32 1, %s607_s16  ;;  %s40_s21 = sadd.s32 1, %s599_s14 }
   0x8   : > { %p33_p0 = scmp.ge.s32.totalorder %s31_s20, 2  ;;  %p47_p1 = scmp.ne.s32.totalorder %s599_s14, %s595_s13 }
   0x9   : > { %p48_p2 = scmp.eq.s32.totalorder %s611_s17, 0  ;;  %p53_p3 = scmp.ne.s32.totalorder %s595_s13, %s591_s12 }
   0xa   : > { %s802_s20 = smov (%p33_p0, %s31_s20), 0  ;;  %p54_p5 = scmp.eq.s32.totalorder %s415_s18, 0 }
   0xb   : > { %p678_p4 = por %p48_p2, %p47_p1  ;;  %s35_s23 = ssub.s32 %s607_s16, %s802_s20 }
   0xc   : > { %p121_p6 = scmp.eq.s32.totalorder %s415_s18, 1  ;;  %p38_p7 = scmp.eq.s32.totalorder %s35_s23, 0 }
   0xd   : > { %p684_p8 = por %p54_p5, %p53_p3  ;;  %p127_p10 = scmp.eq.s32.totalorder %s416_s19, 1 }
   0xe   : > { %p688_p9 = por %p121_p6, %p47_p1  ;;  %p446_p13 = scmp.lt.s32.totalorder %s611_s17, 2 }
   0xf   : > { %s693_s26 = scalar_select %p38_p7, %s599_s14, %s40_s21  }
  0x10   : > { %p695_p11 = por %p127_p10, %p53_p3  ;;  %s153_s28 = sand.u32 1, %s599_s14  }
  0x11   : > { %s419_s29 = sshll.u32 %s153_s28, 2  ;;  %s432_s30 = sshll.u32 %s607_s16, 6 }
  0x12   : > { %s792_s27 = scalar_select %p695_p11, 1, 0 }
  0x13   : > { %s165_s6 = scalar_lea.hbm %s785_s0, %s432_s30  ;;  %s157_s7 = scalar_lea.vmem [#allocation2], %s419_s29 }
  0x14   : > { %s167_s8 = sshll.u32 %s157_s7, 4  ;;  %p708_p0 = pnand %p446_p13, %p678_p4  ;;  %s168_s8 = int_to_ptr.vmem [resolvable:$true] %s167_s8 }
  0x15   : > { %p422_p1 = scmp.ge.s32.totalorder %s611_s17, 1  ;;  %p172_p2 = scmp.lt.s32.totalorder %s611_s17, 3 }
  0x16   : > { %s154_s10 = scalar_lea.sflag [#allocation3], %s153_s28  ;;  %p505_p3 = pneg %p708_p0 }
  0x17   : > { %s516_s11 = scalar_lea.vmem %s168_s8, 64  ;;  %s613_s18 = smov [#allocation2]  }
  0x18   : > { %p517_p5 = scmp.ne.s32.totalorder %s168_s8, %s516_s11  ;;  %s521_s19 = sshll.u32 %s613_s18, 4  ;;  %s522_s19 = int_to_ptr.vmem [resolvable:$false] %s521_s19 }
  0x19   : > { %s523_s21 = scalar_lea.vmem %s522_s19, 128  ;;  %p524_p10 = scmp.lt.s32.totalorder %s168_s8, %s522_s19 }
  0x1a   : > { %p519_p6 = pnand %p517_p5, %p505_p3  ;;  %p525_p12 = scmp.lt.s32.totalorder %s523_s21, %s516_s11 }
  0x1c   : > { %p520_p7 = pneg %p519_p6  ;;  %p526_p4 = por %p525_p12, %p524_p10 }
  0x1e   : > { %p527_p13 = pnand %p526_p4, %p520_p7 }
  0x20   : > { %530 = shalt.err (!%p527_p13)
}
  0x21   : > { %441 = dma.hbm_to_vmem [thread:$0]  (!%p708_p0), %s165_s6, 64, %s168_s8, %s154_s10  }
  0x22   : > { %p173_p11 = pnand %p422_p1, %p172_p2 }
  0x23   : > { %s723_s22 = sand.u32 (!%p173_p11), 1, %s595_s13  }
  0x24   : > { %176 = sbr.rel (%p173_p11) target bundleno = 198 (0xc6), region = 32  ;;  %s423_s23 = sshll.u32 (!%p173_p11), %s723_s22, 2 }
  0x25   : > { %s179_s28 = scalar_lea.sflag (!%p173_p11), [#allocation3], %s723_s22  ;;  %s182_s29 = scalar_lea.vmem (!%p173_p11), [#allocation2], %s423_s23 }
  0x29   : > { %582 = dma.done.wait (%p684_p8), %s179_s28, 64  }
  0x2a   : > { %584 = vsyncadd (%p684_p8), %s179_s28, 4294967232  ;;  %v614_v0 = vmov 0   ;;  %v258_v1 = vld [vmem:[%s786_s1] sm:$0x3]  ;;  %vm212_vm0 = vcmask 1043456   ;;  %v270_v48 = vlaneseq  ;;  %s433_s24 = sshll.u32 %s603_s15, 6 }
  0x2b   : > { %498 = vset.pattern.permute.xlu0 %v614_v0  ;;  %v260_v2 = vld [vmem:[%s787_s2] sm:$0x3]  ;;  %v259_v3 = vunpack.c.l.bf16 %v258_v1  ;;  %v615_v46 = vmov 839922192   ;;  %s204_s7 = scalar_lea.vmem [#allocation5], %s423_s23  ;;  %s329_s11 = scalar_lea.hbm %s788_s3, %s433_s24 }
  0x2c   : > { %v261_v4 = vunpack.c.l.bf16 %v260_v2  ;;  %v207_v5 = vld [vmem:[%s182_s29] sm:$0xf]  ;;  %v268_v47 = vunpack.c.l.s4 %v615_v46  ;;  %v271_v50 = vshrl.u32 %v270_v48, 7  ;;  %s331_s8 = sshll.u32 %s204_s7, 4  ;;  %s315_s18 = scalar_lea.sflag [#allocation4], %s723_s22  ;;  %s332_s8 = int_to_ptr.vmem [resolvable:$true] %s331_s8 }
  0x2d   : > { %264 = vperm.xlu0 %498, %v259_v3   ;;  %v208_v6 = vunpack.c.l.bf16 %v207_v5  ;;  %s531_s19 = scalar_lea.vmem %s332_s8, 64  ;;  %s616_s21 = smov [#allocation5]  }
  0x2e   : > { %v269_v49 = vunpack.c.0.s8 %v268_v47  ;;  %p532_p8 = scmp.ne.s32.totalorder %s332_s8, %s531_s19  ;;  %s535_s28 = sshll.u32 %s616_s21, 4  ;;  %s536_s28 = int_to_ptr.vmem [resolvable:$false] %s535_s28 }
  0x2f   : > { %v210_v7 = vcombine.high %v208_v6, %v208_v6  ;;  %v213_v8 = vsel %vm212_vm0, %v208_v6, 0.0  ;;  %s537_s15 = scalar_lea.vmem %s536_s28, 128  ;;  %p538_p0 = scmp.lt.s32.totalorder %s332_s8, %s536_s28 }
  0x30   : > { %v214_v10 = vrot.slane %v213_v8, 4  ;;  %v272_v51 = vsub.s32 %v269_v49, %v271_v50  ;;  %p533_p11 = pnand %p532_p8, %p688_p9  ;;  %p539_p1 = scmp.lt.s32.totalorder %s537_s15, %s531_s19 }
  0x31   : > { %286 = vperm.xlu0 %498, %v261_v4   ;;  %v220_v9 = vsel %vm212_vm0, %v210_v7, 0.0 }
  0x32   : > { %v221_v11 = vrot.slane %v220_v9, 4  ;;  %v215_v12 = vadd.f32 %v214_v10, %v213_v8  ;;  %p534_p12 = pneg %p533_p11  ;;  %p540_p2 = por %p539_p1, %p538_p0 }
  0x34   : > { %v222_v13 = vadd.f32 %v221_v11, %v220_v9  ;;  %v216_v14 = vrot.slane %v215_v12, 2  ;;  %p541_p3 = pnand %p540_p2, %p534_p12 }
  0x36   : > { %v223_v15 = vrot.slane %v222_v13, 2  ;;  %v217_v16 = vadd.f32 %v216_v14, %v215_v12 }
  0x38   : > { %v224_v17 = vadd.f32 %v223_v15, %v222_v13  ;;  %v218_v18 = vrot.slane %v217_v16, 1 }
  0x3a   : > { %v225_v19 = vrot.slane %v224_v17, 1  ;;  %v219_v20 = vadd.f32 %v218_v18, %v217_v16 }
  0x3c   : > { %v226_v21 = vadd.f32 %v225_v19, %v224_v17  ;;  %v227_v22 = vmul.f32 0.25, %v219_v20 }
  0x3e   : > { %v228_v23 = vmul.f32 0.25, %v226_v21 }
  0x40   : > { %v231_v24 = vcombine.low %v227_v22, %v228_v23 }
  0x42   : > { %v233_v25 = vsub.f32 %v208_v6, %v231_v24 }
  0x44   : > { %v234_v26 = vmul.f32 %v233_v25, %v233_v25 }
  0x46   : > { %v236_v27 = vcombine.high %v234_v26, %v234_v26  ;;  %v238_v28 = vsel %vm212_vm0, %v234_v26, 0.0 }
  0x47   : > { %v239_v30 = vrot.slane %v238_v28, 4 }
  0x48   : > { %v245_v29 = vsel %vm212_vm0, %v236_v27, 0.0 }
  0x49   : > { %v246_v31 = vrot.slane %v245_v29, 4  ;;  %v240_v32 = vadd.f32 %v239_v30, %v238_v28 }
  0x4b   : > { %v247_v33 = vadd.f32 %v246_v31, %v245_v29  ;;  %v241_v34 = vrot.slane %v240_v32, 2 }
  0x4d   : > { %v248_v35 = vrot.slane %v247_v33, 2  ;;  %v242_v36 = vadd.f32 %v241_v34, %v240_v32 }
  0x4f   : > { %v249_v37 = vadd.f32 %v248_v35, %v247_v33  ;;  %v243_v38 = vrot.slane %v242_v36, 1 }
  0x51   : > { %v250_v39 = vrot.slane %v249_v37, 1  ;;  %v244_v40 = vadd.f32 %v243_v38, %v242_v36 }
  0x53   : > { %v251_v41 = vadd.f32 %v250_v39, %v249_v37  ;;  %v252_v42 = vmul.f32 0.25, %v244_v40 }
  0x55   : > { %v253_v43 = vmul.f32 0.25, %v251_v41  ;;  %v254_v44 = vadd.f32 1e-05, %v252_v42 }
  0x57   : > { %v255_v45 = vadd.f32 1e-05, %v253_v43  ;;  %499 = vrsqrt.f32 %v254_v44 }
  0x59   : > { %501 = vrsqrt.f32 %v255_v45 }
  0x64   : > { %v500_v53 = vpop.eup %499 }
  0x66   : > { %v502_v55 = vpop.eup %501 }
  0xa8   : > { %v265_v52 = vpop.permute.xlu0 %264 }
  0xa9   : > { %v273_v54 = vrot.slane %v265_v52, %v272_v51 }
  0xab   : > { %v275_v56 = vcombine.high %v273_v54, %v273_v54  ;;  %v277_v57 = vmul.f32 %v500_v53, %v273_v54 }
  0xac   : > { %v287_v59 = vpop.permute.xlu0 %286 }
  0xad   : > { %v278_v58 = vmul.f32 %v502_v55, %v275_v56  ;;  %v295_v62 = vrot.slane %v287_v59, %v272_v51 }
  0xaf   : > { %v281_v60 = vcombine.low %v277_v57, %v278_v58 }
  0xb1   : > { %v283_v61 = vmul.f32 %v281_v60, %v233_v25 }
  0xb3   : > { %v296_v63 = vadd.f32 %v295_v62, %v283_v61 }
  0xb5   : > { %v298_v0 = vcombine.high %v296_v63, %v296_v63 }
  0xb7   : > { %v425_v1 = vpack.c.bf16 %v298_v0, %v296_v63 }
  0xb9   : > { %426 = vst.sshfl [vmem:[%s204_s7] sm:$0x33 pattern:$0x76325410] %v425_v1 }
  0xba   : > { %544 = shalt.err (!%p541_p3)
}
  0xbb   : > { %s545_s23 = scalar_lea.hbm %s329_s11, 64  ;;  %s549_s30 = scalar_lea.hbm %s788_s3, 128 }
  0xbc   : > { %p546_p5 = scmp.ne.s32.totalorder %s329_s11, %s545_s23  ;;  %p550_p10 = scmp.lt.s32.totalorder %s329_s11, %s788_s3 }
  0xbd   : > { %p551_p4 = scmp.lt.s32.totalorder %s549_s30, %s545_s23 }
  0xbe   : > { %p547_p6 = pnand %p546_p5, %p688_p9 }
  0xbf   : > { %p552_p13 = por %p551_p4, %p550_p10 }
  0xc0   : > { %p548_p7 = pneg %p547_p6 }
  0xc2   : > { %p553_p8 = pnand %p552_p13, %p548_p7 }
  0xc4   : > { %556 = shalt.err (!%p553_p8)
}
  0xc5   : > { %436 = dma.vmem_to_hbm [thread:$0]  (%p688_p9), %s332_s8, 64, %s329_s11, %s315_s18  }
  0xc6 PF: > { %s343_s6 = sand.u32 1, %s591_s12   ;;  %p794_p11 = scmp.ne.s32.totalorder %s792_s27, 0 }
  0xc7   : > { %p795_p12 = scmp.ge.s32.totalorder %s611_s17, 2  ;;  %s344_s24 = scalar_lea.sflag [#allocation4], %s343_s6 }
  0xc9   : > { %p443_p0 = pnand %p795_p12, %p794_p11 }
  0xcb   : > { %p444_p1 = pneg %p443_p0 }
  0xcd   : > { %586 = dma.done.wait (%p444_p1), %s344_s24, 64  }
  0xce   : > { %588 = vsyncadd (%p444_p1), %s344_s24, 4294967232  ;;  %s19_s17 = sadd.s32 1, %s611_s17   ;;  %s796_s12 = smov %s595_s13 }
  0xcf   : > { %p16_p2 = scmp.ge.s32.totalorder %s19_s17, 4   ;;  %s797_s13 = smov %s599_s14 }
  0xd0   : > { %s798_s14 = smov %s693_s26  ;;  %s799_s15 = smov %s607_s16 }
  0xd1   : > { %s800_s16 = smov %s802_s20  ;;  %18 = sbr.rel (!%p16_p2) target bundleno = 6 (0x6), region = 77 }
  0xd6   :  { %349 = vsyncpa [#allocation3], 1 }
  0xd7   :  { %351 = vsyncpa [#allocation3 + $0x1], 1 }
  0xd8   :  { %352 = vsyncpa [#allocation4], 1 }
  0xd9   :  { %354 = vsyncpa [#allocation4 + $0x1], 1 }

</bundles_post_ra>
